<compile_context>
chip_gen: v7x
topology: tpu7x:2x2x1
jax: 0.10.0
libtpu: 0.0.40
codegen_flags: <defaults>
</compile_context>

<pallas_src>
import functools
import math

import jax
import jax.numpy as jnp
import numpy as np
from jax import lax
from jax.experimental import pallas as pl
from jax.experimental.pallas import tpu as pltpu


# ----------------------------- small helpers -----------------------------

def _silu(x):
    return x * jax.nn.sigmoid(x)


def _layer_norm(x, eps):
    mu = jnp.mean(x, axis=-1, keepdims=True)
    var = jnp.mean((x - mu) ** 2, axis=-1, keepdims=True)
    return (x - mu) * lax.rsqrt(var + eps)


def _round_up(x, m):
    return (x + m - 1) // m * m


# ------------------- Kernel 1: LN + uvqk matmul + SiLU --------------------

def _uvqk_kernel(x_ref, w_ref, o_ref, *, eps, mxu_dtype):
    x = x_ref[...].astype(jnp.float32)
    nx = _layer_norm(x, eps)                       # VPU math stays f32 (v5e-safe)
    y = jnp.dot(nx.astype(mxu_dtype), w_ref[...],  # bf16 MXU operands, f32 acc
                preferred_element_type=jnp.float32)
    o_ref[...] = _silu(y).astype(o_ref.dtype)


def uvqk_proj(x, w, *, eps=1e-6, mxu_dtype=jnp.bfloat16, tm=None):
    """Tiled over L rows; weight stays VMEM-resident across the grid."""
    L, D = x.shape
    O = w.shape[1]
    if tm is None:
        # Keep double-buffered activation tiles well under the 32 MiB scoped-VMEM
        # default (valid for v5e/v6e and the 64 MiB-VMEM v7x):
        #   ~2 * TM * (D + O) * 4B  <= 8 MiB
        budget = 8 * 1024 * 1024
        tm = budget // max(4 * (D + 2 * O), 1)
        tm = max(8, min(1024, (tm // 8) * 8))
    tm = min(tm, _round_up(L, 8))                  # tiny-shape clamp (still mult of 8)
    Lp = _round_up(L, tm)
    if Lp != L:
        x = jnp.pad(x, ((0, Lp - L), (0, 0)))      # LN/matmul of zero rows -> zeros

    kernel = functools.partial(_uvqk_kernel, eps=eps, mxu_dtype=mxu_dtype)
    return pl.pallas_call(
        kernel,
        out_shape=jax.ShapeDtypeStruct((Lp, O), jnp.float32),
        grid=(Lp // tm,),
        in_specs=[
            pl.BlockSpec((tm, D), lambda i: (i, 0)),
            pl.BlockSpec((D, O), lambda i: (0, 0)),   # resident weight
        ],
        out_specs=pl.BlockSpec((tm, O), lambda i: (i, 0)),
        compiler_params=pltpu.CompilerParams(dimension_semantics=("parallel",)),
        cost_estimate=pl.CostEstimate(
            flops=2 * Lp * D * O,
            transcendentals=Lp * O,
            bytes_accessed=4 * (Lp * D + Lp * O) + 2 * D * O),
    )(x, w.astype(mxu_dtype))                       # (Lp, O) f32; rows >= L are padding


# ------- Kernel 2: fused attention (all heads) + LN + u*a + out proj -------

def _fused_attn_out_kernel(proj_ref, x_ref, mask_ref, wo_ref, bo_ref, o_ref,
                           *, num_heads, attention_dim, linear_dim, eps, mxu_dtype):
    n = mask_ref.shape[-1]
    f = num_heads * linear_dim
    proj = proj_ref[0]                               # (N, O) f32, packed [u|v|q|k]
    u = proj[:, :f]
    v = proj[:, f:2 * f]
    q = proj[:, 2 * f:2 * f + num_heads * attention_dim]
    k = proj[:, 2 * f + num_heads * attention_dim:]
    mask = mask_ref[...]
    inv_n = 1.0 / n

    head_outs = []
    for h in range(num_heads):                       # static unrolled head loop
        qh = q[:, h * attention_dim:(h + 1) * attention_dim].astype(mxu_dtype)
        kh = k[:, h * attention_dim:(h + 1) * attention_dim].astype(mxu_dtype)
        vh = v[:, h * linear_dim:(h + 1) * linear_dim].astype(mxu_dtype)
        # contract last dims directly: no explicit k transpose (no XLU copy)
        qk = lax.dot_general(qh, kh, (((1,), (1,)), ((), ())),
                             preferred_element_type=jnp.float32)
        p = _silu(qk) * inv_n * mask                 # VPU math in f32
        head_outs.append(
            lax.dot_general(p.astype(mxu_dtype), vh, (((1,), (0,)), ((), ())),
                            preferred_element_type=jnp.float32))
    attn = jnp.concatenate(head_outs, axis=-1)       # (N, H*ld), stays in VMEM

    a = _layer_norm(attn, eps)
    o_in = (u * a).astype(mxu_dtype)
    y = lax.dot_general(o_in, wo_ref[...], (((1,), (0,)), ((), ())),
                        preferred_element_type=jnp.float32)
    o_ref[0] = y + bo_ref[...] + x_ref[0]            # bias + residual


def fused_attn_output(proj_padded, x_padded, mask, o_w, o_b,
                      *, num_heads, attention_dim, linear_dim,
                      eps=1e-6, mxu_dtype=jnp.bfloat16):
    B, N, O = proj_padded.shape
    D = x_padded.shape[-1]
    F_ = num_heads * linear_dim
    kernel = functools.partial(
        _fused_attn_out_kernel, num_heads=num_heads, attention_dim=attention_dim,
        linear_dim=linear_dim, eps=eps, mxu_dtype=mxu_dtype)
    return pl.pallas_call(
        kernel,
        out_shape=jax.ShapeDtypeStruct((B, N, D), jnp.float32),
        grid=(B,),
        in_specs=[
            pl.BlockSpec((1, N, O), lambda b: (b, 0, 0)),
            pl.BlockSpec((1, N, D), lambda b: (b, 0, 0)),
            pl.BlockSpec((N, N), lambda b: (0, 0)),   # resident mask
            pl.BlockSpec((F_, D), lambda b: (0, 0)),  # resident output weight
            pl.BlockSpec((1, D), lambda b: (0, 0)),   # resident bias
        ],
        out_specs=pl.BlockSpec((1, N, D), lambda b: (b, 0, 0)),
        compiler_params=pltpu.CompilerParams(dimension_semantics=("parallel",)),
        input_output_aliases={1: 0},                  # alias padded-x -> output
    )(proj_padded, x_padded, mask, o_w.astype(mxu_dtype), o_b)


# ------------------- jagged <-> padded glue (vectorized) -------------------

def jagged_to_padded_dense(values, offsets, n):
    """fbgemm.jagged_to_padded_dense equivalent: one vectorized gather."""
    starts = offsets[:-1]                               # (B,)
    lengths = offsets[1:] - starts                      # (B,)
    pos = jnp.arange(n, dtype=offsets.dtype)            # (n,)
    idx = starts[:, None] + pos[None, :]                # (B, n)
    valid = pos[None, :] < lengths[:, None]             # (B, n)
    idx = jnp.where(valid, idx, 0)
    gathered = jnp.take(values, idx.reshape(-1), axis=0)
    gathered = gathered.reshape(idx.shape[0], n, values.shape[-1])
    return jnp.where(valid[..., None], gathered, 0.0)


def dense_to_jagged(padded, offsets, total_length):
    """fbgemm.dense_to_jagged equivalent: one vectorized gather."""
    B, n, D = padded.shape
    lengths = offsets[1:] - offsets[:-1]
    b_of_row = jnp.repeat(jnp.arange(B, dtype=offsets.dtype), lengths,
                          total_repeat_length=total_length)
    pos = jnp.arange(total_length, dtype=offsets.dtype) - offsets[b_of_row]
    flat = b_of_row * n + pos
    return jnp.take(padded.reshape(B * n, D), flat, axis=0)


# ------------------------------ full forward ------------------------------

@functools.partial(jax.jit, static_argnames=("dims",))
def hstu_forward(x, x_offsets, invalid_attn_mask, uvqk_w, o_w, o_b, *, dims):
    D, ld, ad, H = dims
    L = x.shape[0]
    N = invalid_attn_mask.shape[-1]

    # Kernel 1: LN + uvqk matmul + SiLU (tiled over L).
    proj = uvqk_proj(x, uvqk_w)                               # (Lp, O)

    # Jagged -> padded, one gather each (packed proj keeps last dim lane-dense).
    proj_padded = jagged_to_padded_dense(proj, x_offsets, N)  # (B, N, O)
    x_padded = jagged_to_padded_dense(x, x_offsets, N)        # (B, N, D)

    # Kernel 2: fused attention + LN(attn) + u*a + output proj + residual.
    out_padded = fused_attn_output(
        proj_padded, x_padded, invalid_attn_mask, o_w, o_b,
        num_heads=H, attention_dim=ad, linear_dim=ld)         # (B, N, D)

    return dense_to_jagged(out_padded, x_offsets, L)          # (L, D)


# -------------------------- pure-JAX reference ---------------------------

def hstu_reference(x, x_offsets, mask, uvqk_w, o_w, o_b, dims):
    D, ld, ad, H = dims
    B = x_offsets.shape[0] - 1
    N = mask.shape[-1]
    L = x.shape[0]

    nx = _layer_norm(x, 1e-6)
    mm = _silu(nx @ uvqk_w)
    u, v, q, k = jnp.split(mm, [ld * H, 2 * ld * H, 2 * ld * H + ad * H], axis=1)

    pq = jagged_to_padded_dense(q, x_offsets, N).reshape(B, N, H, ad)
    pk = jagged_to_padded_dense(k, x_offsets, N).reshape(B, N, H, ad)
    pv = jagged_to_padded_dense(v, x_offsets, N).reshape(B, N, H, ld)

    qk = jnp.einsum("bnhd,bmhd->bhnm", pq, pk)
    qk = _silu(qk) / N
    qk = qk * mask[None, None]
    att = jnp.einsum("bhnm,bmhd->bnhd", qk, pv).reshape(B, N, H * ld)
    att_j = dense_to_jagged(att, x_offsets, L)

    a = _layer_norm(att_j, 1e-6)
    return (u * a) @ o_w + o_b + x


# --------------------------------- main ----------------------------------

if __name__ == "__main__":
    # module hyperparameters (small, consistent with the forward)
    D = 32           # embedding_dim
    ld = 16          # linear_hidden_dim
    ad = 16          # attention_dim
    H = 2            # num_heads
    B = 2
    N = 8            # max length (invalid_attn_mask is (N, N))
    lengths = [6, 8]
    offsets = jnp.asarray(np.concatenate([[0], np.cumsum(lengths)]).astype(np.int32))
    L = int(np.sum(lengths))

    key = jax.random.PRNGKey(0)
    k_x, k_uvqk, k_ow, k_ob = jax.random.split(key, 4)

    x = jax.random.normal(k_x, (L, D), dtype=jnp.float32)

    # Parameters (deterministic, matching the PyTorch init shapes)
    out_dim = ld * H * 2 + ad * H * 2
    uvqk_w = 0.02 * jax.random.normal(k_uvqk, (D, out_dim), dtype=jnp.float32)
    fan_in, fan_out = ld * H, D
    xav = math.sqrt(6.0 / (fan_in + fan_out))
    o_w = jax.random.uniform(k_ow, (fan_in, D), jnp.float32, -xav, xav)   # weight.T
    bb = 1.0 / math.sqrt(fan_in)
    o_b = jax.random.uniform(k_ob, (1, D), jnp.float32, -bb, bb)

    # invalid_attn_mask: (N, N) float in {0, 1}, causal
    invalid_attn_mask = jnp.tril(jnp.ones((N, N), dtype=jnp.float32))

    dims = (D, ld, ad, H)

    out = hstu_forward(x, offsets, invalid_attn_mask, uvqk_w, o_w, o_b, dims=dims)
    out = jax.block_until_ready(out)

    ref = jax.block_until_ready(
        hstu_reference(x, offsets, invalid_attn_mask, uvqk_w, o_w, o_b, dims))

    # Tolerance accounts for bf16 MXU operands (f32 accumulation) in the kernels.
    np.testing.assert_allclose(np.asarray(out), np.asarray(ref), rtol=1e-2, atol=1e-2)

    print("KERNEL_OK")
</pallas_src>

<mosaic_0001>
module attributes {stable_mosaic.version = 11 : i64} {
  func.func @_uvqk_kernel(%arg0: i32, %arg1: memref<16x32xf32, #tpu.memory_space<vmem>>, %arg2: memref<32x128xbf16, #tpu.memory_space<vmem>>, %arg3: memref<16x128xf32, #tpu.memory_space<vmem>>) attributes {dimension_semantics = [#tpu.dimension_semantics<parallel>], iteration_bounds = array<i64: 1>, scalar_prefetch = 0 : i64, scratch_operands = 0 : i64, tpu.core_type = #tpu.core_type<tc>, window_params = [{transform_indices = @transform_0, window_bounds = array<i64: 16, 32>}, {pipeline_mode = #tpu.pipeline_mode<synchronous>, transform_indices = @transform_1, window_bounds = array<i64: 32, 128>}, {transform_indices = @transform_2, window_bounds = array<i64: 16, 128>}]} {
    %c0 = arith.constant 0 : index
    %c0_0 = arith.constant 0 : index
    %0 = vector.load %arg1[%c0, %c0_0] : memref<16x32xf32, #tpu.memory_space<vmem>>, vector<16x32xf32>
    %cst = arith.constant dense<0.000000e+00> : vector<16xf32>
    %1 = vector.multi_reduction <add>, %0, %cst [1] : vector<16x32xf32> to vector<16xf32>
    %2 = vector.shape_cast %1 : vector<16xf32> to vector<16x1xf32>
    %cst_1 = arith.constant 3.200000e+01 : f32
    %3 = vector.broadcast %cst_1 : f32 to vector<16x1xf32>
    %4 = arith.divf %2, %3 : vector<16x1xf32>
    %5 = vector.broadcast %4 : vector<16x1xf32> to vector<16x32xf32>
    %6 = arith.subf %0, %5 : vector<16x32xf32>
    %7 = arith.mulf %6, %6 : vector<16x32xf32>
    %cst_2 = arith.constant dense<0.000000e+00> : vector<16xf32>
    %8 = vector.multi_reduction <add>, %7, %cst_2 [1] : vector<16x32xf32> to vector<16xf32>
    %9 = vector.shape_cast %8 : vector<16xf32> to vector<16x1xf32>
    %cst_3 = arith.constant 3.200000e+01 : f32
    %10 = vector.broadcast %cst_3 : f32 to vector<16x1xf32>
    %11 = arith.divf %9, %10 : vector<16x1xf32>
    %12 = vector.broadcast %4 : vector<16x1xf32> to vector<16x32xf32>
    %13 = arith.subf %0, %12 : vector<16x32xf32>
    %cst_4 = arith.constant 9.99999997E-7 : f32
    %14 = vector.broadcast %cst_4 : f32 to vector<16x1xf32>
    %15 = arith.addf %11, %14 : vector<16x1xf32>
    %16 = math.rsqrt %15 : vector<16x1xf32>
    %17 = vector.broadcast %16 : vector<16x1xf32> to vector<16x32xf32>
    %18 = arith.mulf %13, %17 : vector<16x32xf32>
    %19 = arith.truncf %18 : vector<16x32xf32> to vector<16x32xbf16>
    %c0_5 = arith.constant 0 : index
    %c0_6 = arith.constant 0 : index
    %20 = vector.load %arg2[%c0_5, %c0_6] : memref<32x128xbf16, #tpu.memory_space<vmem>>, vector<32x128xbf16>
    %cst_7 = arith.constant dense<0.000000e+00> : vector<16x128xf32>
    %21 = tpu.matmul %19, %20, %cst_7 {dimension_numbers = #tpu.dot_dimension_numbers<[1], [0], [0], [1], [0, 0, 1, 1], [], []>} : vector<16x32xbf16>, vector<32x128xbf16>, vector<16x128xf32> -> vector<16x128xf32>
    %22 = arith.negf %21 : vector<16x128xf32>
    %23 = math.exp %22 : vector<16x128xf32>
    %cst_8 = arith.constant 1.000000e+00 : f32
    %24 = vector.broadcast %cst_8 : f32 to vector<16x128xf32>
    %25 = arith.addf %24, %23 : vector<16x128xf32>
    %26 = arith.divf %24, %25 : vector<16x128xf32>
    %27 = arith.mulf %21, %26 : vector<16x128xf32>
    %c0_9 = arith.constant 0 : index
    %c0_10 = arith.constant 0 : index
    %28 = vector.load %arg3[%c0_9, %c0_10] : memref<16x128xf32, #tpu.memory_space<vmem>>, vector<16x128xf32>
    tpu.vector_store %arg3[%c0_9, %c0_10], %27 {strides = array<i32>} : memref<16x128xf32, #tpu.memory_space<vmem>>, vector<16x128xf32>,
    return
  }
  func.func @transform_0(%arg0: i32) -> (i32, i32) {
    %c0_i32 = arith.constant 0 : i32
    %c0_i32_0 = arith.constant 0 : i32
    return %arg0, %c0_i32 : i32, i32
  }
  func.func @transform_1(%arg0: i32) -> (i32, i32) {
    %c0_i32 = arith.constant 0 : i32
    %c0_i32_0 = arith.constant 0 : i32
    %c0_i32_1 = arith.constant 0 : i32
    return %c0_i32, %c0_i32_0 : i32, i32
  }
  func.func @transform_2(%arg0: i32) -> (i32, i32) {
    %c0_i32 = arith.constant 0 : i32
    %c0_i32_0 = arith.constant 0 : i32
    return %arg0, %c0_i32 : i32, i32
  }
}

module attributes {stable_mosaic.version = 11 : i64} {
  func.func @_fused_attn_out_kernel(%arg0: i32, %arg1: memref<1x8x128xf32, #tpu.memory_space<vmem>>, %arg2: memref<1x8x32xf32, #tpu.memory_space<vmem>>, %arg3: memref<8x8xf32, #tpu.memory_space<vmem>>, %arg4: memref<32x32xbf16, #tpu.memory_space<vmem>>, %arg5: memref<1x32xf32, #tpu.memory_space<vmem>>, %arg6: memref<1x8x32xf32, #tpu.memory_space<vmem>>) attributes {dimension_semantics = [#tpu.dimension_semantics<parallel>], iteration_bounds = array<i64: 2>, scalar_prefetch = 0 : i64, scratch_operands = 0 : i64, tpu.core_type = #tpu.core_type<tc>, window_params = [{transform_indices = @transform_0, window_bounds = array<i64: 1, 8, 128>}, {transform_indices = @transform_1, window_bounds = array<i64: 1, 8, 32>}, {pipeline_mode = #tpu.pipeline_mode<synchronous>, transform_indices = @transform_2, window_bounds = array<i64: 8, 8>}, {pipeline_mode = #tpu.pipeline_mode<synchronous>, transform_indices = @transform_3, window_bounds = array<i64: 32, 32>}, {pipeline_mode = #tpu.pipeline_mode<synchronous>, transform_indices = @transform_4, window_bounds = array<i64: 1, 32>}, {transform_indices = @transform_5, window_bounds = array<i64: 1, 8, 32>}]} {
    %c0 = arith.constant 0 : index
    %c0_0 = arith.constant 0 : index
    %c0_1 = arith.constant 0 : index
    %0 = vector.load %arg1[%c0, %c0_0, %c0_1] : memref<1x8x128xf32, #tpu.memory_space<vmem>>, vector<1x8x128xf32>
    %1 = vector.shape_cast %0 : vector<1x8x128xf32> to vector<8x128xf32>
    %2 = vector.extract_strided_slice %1 {offsets = [0, 0], sizes = [8, 32], strides = [1, 1]} : vector<8x128xf32> to vector<8x32xf32>
    %3 = vector.extract_strided_slice %1 {offsets = [0, 32], sizes = [8, 32], strides = [1, 1]} : vector<8x128xf32> to vector<8x32xf32>
    %4 = vector.extract_strided_slice %1 {offsets = [0, 64], sizes = [8, 32], strides = [1, 1]} : vector<8x128xf32> to vector<8x32xf32>
    %5 = vector.extract_strided_slice %1 {offsets = [0, 96], sizes = [8, 32], strides = [1, 1]} : vector<8x128xf32> to vector<8x32xf32>
    %c0_2 = arith.constant 0 : index
    %c0_3 = arith.constant 0 : index
    %6 = vector.load %arg3[%c0_2, %c0_3] : memref<8x8xf32, #tpu.memory_space<vmem>>, vector<8x8xf32>
    %7 = vector.extract_strided_slice %4 {offsets = [0, 0], sizes = [8, 16], strides = [1, 1]} : vector<8x32xf32> to vector<8x16xf32>
    %8 = arith.truncf %7 : vector<8x16xf32> to vector<8x16xbf16>
    %9 = vector.extract_strided_slice %5 {offsets = [0, 0], sizes = [8, 16], strides = [1, 1]} : vector<8x32xf32> to vector<8x16xf32>
    %10 = arith.truncf %9 : vector<8x16xf32> to vector<8x16xbf16>
    %11 = vector.extract_strided_slice %3 {offsets = [0, 0], sizes = [8, 16], strides = [1, 1]} : vector<8x32xf32> to vector<8x16xf32>
    %12 = arith.truncf %11 : vector<8x16xf32> to vector<8x16xbf16>
    %cst = arith.constant dense<0.000000e+00> : vector<8x8xf32>
    %13 = tpu.matmul %8, %10, %cst {dimension_numbers = #tpu.dot_dimension_numbers<[1], [1], [0], [0], [0, 0, 1, 0], [], []>} : vector<8x16xbf16>, vector<8x16xbf16>, vector<8x8xf32> -> vector<8x8xf32>
    %14 = arith.negf %13 : vector<8x8xf32>
    %15 = math.exp %14 : vector<8x8xf32>
    %cst_4 = arith.constant 1.000000e+00 : f32
    %16 = vector.broadcast %cst_4 : f32 to vector<8x8xf32>
    %17 = arith.addf %16, %15 : vector<8x8xf32>
    %18 = arith.divf %16, %17 : vector<8x8xf32>
    %19 = arith.mulf %13, %18 : vector<8x8xf32>
    %cst_5 = arith.constant 1.250000e-01 : f32
    %20 = vector.broadcast %cst_5 : f32 to vector<8x8xf32>
    %21 = arith.mulf %19, %20 : vector<8x8xf32>
    %22 = arith.mulf %21, %6 : vector<8x8xf32>
    %23 = arith.truncf %22 : vector<8x8xf32> to vector<8x8xbf16>
    %cst_6 = arith.constant dense<0.000000e+00> : vector<8x16xf32>
    %24 = tpu.matmul %23, %12, %cst_6 {dimension_numbers = #tpu.dot_dimension_numbers<[1], [0], [0], [1], [0, 0, 1, 1], [], []>} : vector<8x8xbf16>, vector<8x16xbf16>, vector<8x16xf32> -> vector<8x16xf32>
    %25 = vector.extract_strided_slice %4 {offsets = [0, 16], sizes = [8, 16], strides = [1, 1]} : vector<8x32xf32> to vector<8x16xf32>
    %26 = arith.truncf %25 : vector<8x16xf32> to vector<8x16xbf16>
    %27 = vector.extract_strided_slice %5 {offsets = [0, 16], sizes = [8, 16], strides = [1, 1]} : vector<8x32xf32> to vector<8x16xf32>
    %28 = arith.truncf %27 : vector<8x16xf32> to vector<8x16xbf16>
    %29 = vector.extract_strided_slice %3 {offsets = [0, 16], sizes = [8, 16], strides = [1, 1]} : vector<8x32xf32> to vector<8x16xf32>
    %30 = arith.truncf %29 : vector<8x16xf32> to vector<8x16xbf16>
    %cst_7 = arith.constant dense<0.000000e+00> : vector<8x8xf32>
    %31 = tpu.matmul %26, %28, %cst_7 {dimension_numbers = #tpu.dot_dimension_numbers<[1], [1], [0], [0], [0, 0, 1, 0], [], []>} : vector<8x16xbf16>, vector<8x16xbf16>, vector<8x8xf32> -> vector<8x8xf32>
    %32 = arith.negf %31 : vector<8x8xf32>
    %33 = math.exp %32 : vector<8x8xf32>
    %cst_8 = arith.constant 1.000000e+00 : f32
    %34 = vector.broadcast %cst_8 : f32 to vector<8x8xf32>
    %35 = arith.addf %34, %33 : vector<8x8xf32>
    %36 = arith.divf %34, %35 : vector<8x8xf32>
    %37 = arith.mulf %31, %36 : vector<8x8xf32>
    %cst_9 = arith.constant 1.250000e-01 : f32
    %38 = vector.broadcast %cst_9 : f32 to vector<8x8xf32>
    %39 = arith.mulf %37, %38 : vector<8x8xf32>
    %40 = arith.mulf %39, %6 : vector<8x8xf32>
    %41 = arith.truncf %40 : vector<8x8xf32> to vector<8x8xbf16>
    %cst_10 = arith.constant dense<0.000000e+00> : vector<8x16xf32>
    %42 = tpu.matmul %41, %30, %cst_10 {dimension_numbers = #tpu.dot_dimension_numbers<[1], [0], [0], [1], [0, 0, 1, 1], [], []>} : vector<8x8xbf16>, vector<8x16xbf16>, vector<8x16xf32> -> vector<8x16xf32>
    %43 = tpu.concatenate %24, %42 in 1 : vector<8x16xf32>, vector<8x16xf32> -> vector<8x32xf32>
    %cst_11 = arith.constant dense<0.000000e+00> : vector<8xf32>
    %44 = vector.multi_reduction <add>, %43, %cst_11 [1] : vector<8x32xf32> to vector<8xf32>
    %45 = vector.shape_cast %44 : vector<8xf32> to vector<8x1xf32>
    %cst_12 = arith.constant 3.200000e+01 : f32
    %46 = vector.broadcast %cst_12 : f32 to vector<8x1xf32>
    %47 = arith.divf %45, %46 : vector<8x1xf32>
    %48 = vector.broadcast %47 : vector<8x1xf32> to vector<8x32xf32>
    %49 = arith.subf %43, %48 : vector<8x32xf32>
    %50 = arith.mulf %49, %49 : vector<8x32xf32>
    %cst_13 = arith.constant dense<0.000000e+00> : vector<8xf32>
    %51 = vector.multi_reduction <add>, %50, %cst_13 [1] : vector<8x32xf32> to vector<8xf32>
    %52 = vector.shape_cast %51 : vector<8xf32> to vector<8x1xf32>
    %cst_14 = arith.constant 3.200000e+01 : f32
    %53 = vector.broadcast %cst_14 : f32 to vector<8x1xf32>
    %54 = arith.divf %52, %53 : vector<8x1xf32>
    %55 = vector.broadcast %47 : vector<8x1xf32> to vector<8x32xf32>
    %56 = arith.subf %43, %55 : vector<8x32xf32>
    %cst_15 = arith.constant 9.99999997E-7 : f32
    %57 = vector.broadcast %cst_15 : f32 to vector<8x1xf32>
    %58 = arith.addf %54, %57 : vector<8x1xf32>
    %59 = math.rsqrt %58 : vector<8x1xf32>
    %60 = vector.broadcast %59 : vector<8x1xf32> to vector<8x32xf32>
    %61 = arith.mulf %56, %60 : vector<8x32xf32>
    %62 = arith.mulf %2, %61 : vector<8x32xf32>
    %63 = arith.truncf %62 : vector<8x32xf32> to vector<8x32xbf16>
    %c0_16 = arith.constant 0 : index
    %c0_17 = arith.constant 0 : index
    %64 = vector.load %arg4[%c0_16, %c0_17] : memref<32x32xbf16, #tpu.memory_space<vmem>>, vector<32x32xbf16>
    %cst_18 = arith.constant dense<0.000000e+00> : vector<8x32xf32>
    %65 = tpu.matmul %63, %64, %cst_18 {dimension_numbers = #tpu.dot_dimension_numbers<[1], [0], [0], [1], [0, 0, 1, 1], [], []>} : vector<8x32xbf16>, vector<32x32xbf16>, vector<8x32xf32> -> vector<8x32xf32>
    %c0_19 = arith.constant 0 : index
    %c0_20 = arith.constant 0 : index
    %66 = vector.load %arg5[%c0_19, %c0_20] : memref<1x32xf32, #tpu.memory_space<vmem>>, vector<1x32xf32>
    %67 = vector.broadcast %66 : vector<1x32xf32> to vector<8x32xf32>
    %68 = arith.addf %65, %67 : vector<8x32xf32>
    %c0_21 = arith.constant 0 : index
    %c0_22 = arith.constant 0 : index
    %c0_23 = arith.constant 0 : index
    %69 = vector.load %arg2[%c0_21, %c0_22, %c0_23] : memref<1x8x32xf32, #tpu.memory_space<vmem>>, vector<1x8x32xf32>
    %70 = vector.shape_cast %69 : vector<1x8x32xf32> to vector<8x32xf32>
    %71 = arith.addf %68, %70 : vector<8x32xf32>
    %c0_24 = arith.constant 0 : index
    %c0_25 = arith.constant 0 : index
    %c0_26 = arith.constant 0 : index
    %72 = vector.load %arg6[%c0_24, %c0_25, %c0_26] : memref<1x8x32xf32, #tpu.memory_space<vmem>>, vector<1x8x32xf32>
    %73 = vector.shape_cast %72 : vector<1x8x32xf32> to vector<8x32xf32>
    %74 = vector.shape_cast %71 : vector<8x32xf32> to vector<1x8x32xf32>
    tpu.vector_store %arg6[%c0_24, %c0_25, %c0_26], %74 {strides = array<i32>} : memref<1x8x32xf32, #tpu.memory_space<vmem>>, vector<1x8x32xf32>,
    return
  }
  func.func @transform_0(%arg0: i32) -> (i32, i32, i32) {
    %c0_i32 = arith.constant 0 : i32
    %c0_i32_0 = arith.constant 0 : i32
    %c0_i32_1 = arith.constant 0 : i32
    return %arg0, %c0_i32, %c0_i32_0 : i32, i32, i32
  }
  func.func @transform_1(%arg0: i32) -> (i32, i32, i32) {
    %c0_i32 = arith.constant 0 : i32
    %c0_i32_0 = arith.constant 0 : i32
    %c0_i32_1 = arith.constant 0 : i32
    return %arg0, %c0_i32, %c0_i32_0 : i32, i32, i32
  }
  func.func @transform_2(%arg0: i32) -> (i32, i32) {
    %c0_i32 = arith.constant 0 : i32
    %c0_i32_0 = arith.constant 0 : i32
    %c0_i32_1 = arith.constant 0 : i32
    return %c0_i32, %c0_i32_0 : i32, i32
  }
  func.func @transform_3(%arg0: i32) -> (i32, i32) {
    %c0_i32 = arith.constant 0 : i32
    %c0_i32_0 = arith.constant 0 : i32
    %c0_i32_1 = arith.constant 0 : i32
    return %c0_i32, %c0_i32_0 : i32, i32
  }
  func.func @transform_4(%arg0: i32) -> (i32, i32) {
    %c0_i32 = arith.constant 0 : i32
    %c0_i32_0 = arith.constant 0 : i32
    %c0_i32_1 = arith.constant 0 : i32
    return %c0_i32, %c0_i32_0 : i32, i32
  }
  func.func @transform_5(%arg0: i32) -> (i32, i32, i32) {
    %c0_i32 = arith.constant 0 : i32
    %c0_i32_0 = arith.constant 0 : i32
    %c0_i32_1 = arith.constant 0 : i32
    return %arg0, %c0_i32, %c0_i32_0 : i32, i32, i32
  }
}

</mosaic_0001>

<bundles_post_ra>
// kernel: hstu_forward.2
= control target key start
LH: loop header
LB: loop body
LE: loop exit
PB: predicated region body
PF: predicated region fallthrough
CT: control target
= control target key end

     0   :  { %vm14_vm0 = vcmask 261120   ;;  %v155_v14 = vmov 0.0   ;;  %vm156_vm1 = vmmov 0   ;;  %s195_s0 = inlined_call_operand.vmem [shape: f32[16,32], index: 0, kind: input, shape index: {}]   ;;  %s196_s1 = inlined_call_operand.vmem [shape: bf16[32,128], index: 1, kind: input, shape index: {}]   ;;  %s197_s2 = inlined_call_operand.vmem [shape: f32[16,128], index: 2, kind: output, shape index: {}]  }
   0x1   :  { %v12_v0 = vld [vmem:[%s195_s0] sm:$0xff]  ;;  %v13_v1 = vld [vmem:[%s195_s0 + $0x8] sm:$0xff]  ;;  %131 = vmatprep.subr.bf16.mxu0 %v155_v14  ;;  %135 = vmatprep.mubr.msk.bf16.mxu0 %vm156_vm1, %v155_v14 }
   0x2   :  { %v15_v2 = vsel %vm14_vm0, %v12_v0, 0.0  ;;  %v18_v3 = vsel %vm14_vm0, %v13_v1, 0.0  ;;  %v141_v15 = vld [vmem:[%s196_s1] sm:$0xff]   ;;  %v142_v16 = vld [vmem:[%s196_s1 + $0x8] sm:$0xff]  }
   0x3   :  { %16 = vadd.xlane.f32.xlu0 %v15_v2  ;;  %132 = vmatpush3.bf16.msra.mxu0 %v141_v15 }
   0x4   :  { %133 = vmatprep.subr.bf16.mxu0 %v155_v14 }
   0x7   :  { %19 = vadd.xlane.f32.xlu0 %v18_v3  ;;  %134 = vmatpush3.bf16.msra.mxu0 %v142_v16 }
  0x90   :  { %v17_v4 = vpop.xlane.xlu0 %16 }
  0x91   :  { %v22_v5 = vmul.f32 0.03125, %v17_v4 }
  0x93   :  { %v24_v6 = vsub.f32 %v12_v0, %v22_v5 }
  0x94   :  { %v20_v7 = vpop.xlane.xlu0 %19 }
  0x95   :  { %v23_v8 = vmul.f32 0.03125, %v20_v7  ;;  %v26_v9 = vmul.f32 %v24_v6, %v24_v6 }
  0x97   :  { %v25_v10 = vsub.f32 %v13_v1, %v23_v8  ;;  %v28_v11 = vsel %vm14_vm0, %v26_v9, 0.0 }
  0x98   :  { %29 = vadd.xlane.f32.xlu1 %v28_v11 }
  0x99   :  { %v27_v12 = vmul.f32 %v25_v10, %v25_v10 }
  0x9b   :  { %v31_v13 = vsel %vm14_vm0, %v27_v12, 0.0 }
  0x9c   :  { %32 = vadd.xlane.f32.xlu1 %v31_v13 }
 0x125   :  { %v30_v17 = vpop.xlane.xlu1 %29 }
 0x126   :  { %v34_v18 = vmul.f32 0.03125, %v30_v17 }
 0x128   :  { %v36_v19 = vadd.f32 1e-06, %v34_v18 }
 0x129   :  { %v33_v20 = vpop.xlane.xlu1 %32 }
 0x12a   :  { %v35_v21 = vmul.f32 0.03125, %v33_v20  ;;  %143 = vrsqrt.f32 %v36_v19 }
 0x12c   :  { %v37_v22 = vadd.f32 1e-06, %v35_v21 }
 0x12e   :  { %145 = vrsqrt.f32 %v37_v22 }
 0x134   :  { %v144_v23 = vpop.eup %143 }
 0x135   :  { %v40_v25 = vmul.f32 %v144_v23, %v24_v6 }
 0x138   :  { %v146_v24 = vpop.eup %145 }
 0x139   :  { %v41_v26 = vmul.f32 %v146_v24, %v25_v10 }
 0x13b   :  { %v42_v27 = vpack.c.bf16 %v41_v26, %v40_v25 }
 0x13d   :  { %136 = vmatmul.mubr.msk.bf16.vlgmr.msra.gmra.mrb[0].mxu0 %vm14_vm0, %v42_v27 }
 0x210   :  { %v96_v28 = vpop.f32.mrb[0].mxu0 }
 0x211   :  { %v126_v29 = vmul.f32 -1.442695, %v96_v28  ;;  %v137_v30 = vpop.f32.mrb[1].mxu0 }
 0x212   :  { %v99_v31 = vpop.f32.mrb[2].mxu0 }
 0x213   :  { %147 = vpow2.f32 %v126_v29  ;;  %v127_v32 = vmul.f32 -1.442695, %v99_v31  ;;  %v138_v33 = vpop.f32.mrb[3].mxu0 }
 0x215   :  { %149 = vpow2.f32 %v127_v32 }
 0x21d   :  { %v148_v34 = vpop.eup %147 }
 0x21e   :  { %v109_v35 = vadd.f32 1.0, %v148_v34 }
 0x21f   :  { %v150_v36 = vpop.eup %149 }
 0x220   :  { %151 = vrcp.f32 %v109_v35  ;;  %v110_v37 = vadd.f32 1.0, %v150_v36 }
 0x222   :  { %153 = vrcp.f32 %v110_v37 }
 0x22a   :  { %v152_v38 = vpop.eup %151 }
 0x22b   :  { %v115_v39 = vmul.f32 %v152_v38, %v96_v28 }
 0x22c   :  { %v154_v40 = vpop.eup %153 }
 0x22d   :  { %117 = vst [vmem:[%s197_s2] sm:$0xff] %v115_v39  ;;  %v116_v41 = vmul.f32 %v154_v40, %v99_v31 }
 0x22f   :  { %118 = vst [vmem:[%s197_s2 + $0x8] sm:$0xff] %v116_v41 }

// kernel: hstu_forward.3
= control target key start
LH: loop header
LB: loop body
LE: loop exit
PB: predicated region body
PF: predicated region fallthrough
CT: control target
= control target key end

     0   :  { %s754_s18 = smov 0   ;;  %s827_s0 = inlined_call_operand.vmem [shape: f32[2,8,128], index: 0, kind: input, shape index: {}]   ;;  %s828_s1 = inlined_call_operand.vmem [shape: f32[2,8,32], index: 1, kind: input, shape index: {}, may-alias: {1,5}]   ;;  %s829_s2 = inlined_call_operand.vmem [shape: f32[8,8], index: 2, kind: input, shape index: {}]   ;;  %s830_s3 = inlined_call_operand.vmem [shape: bf16[32,32], index: 3, kind: input, shape index: {}]   ;;  %s831_s4 = inlined_call_operand.vmem [shape: f32[1,32], index: 4, kind: input, shape index: {}]   ;;  %s832_s5 = inlined_call_operand.vmem [shape: f32[2,8,32], index: 5, kind: output, shape index: {}, may-alias: {1,5}]  }
   0x1 LB: > { %s617_s19 = sadd.s32 4294967295, %s714_s18   ;;  %p621_p0 = scmp.ge.s32.totalorder %s714_s18, 1  ;;  %s714_s18 = sphi %s754_s18, %s15_s18  }
   0x2   : > { %p195_p1 = scmp.lt.s32.totalorder %s714_s18, 3 }
   0x4   : > { %p196_p2 = pnand %p621_p0, %p195_p1 }
   0x5   : > { %p225_p3 = scmp.lt.s32.totalorder (!%p196_p2), %s617_s19, 1  ;;  %v716_v0 = vmov (!%p196_p2), 0.0   ;;  %vm717_vm0 = vmmov (!%p196_p2), 0   ;;  %s718_s24 = smov (!%p196_p2), 32   ;;  %vm246_vm1 = vcmask (!%p196_p2), 130048   ;;  %vm309_vm2 = vcmask (!%p196_p2), 1043456  }
   0x6   : > { %199 = sbr.rel (%p196_p2) target bundleno = 1500 (0x5dc), region = 40  ;;  %648 = vmatprep.subr.bf16.mxu0 (!%p196_p2), %v716_v0  ;;  %650 = vmatprep.mubr.msk.bf16.mxu0 (!%p196_p2), %vm717_vm0, %v716_v0  ;;  %s719_s25 = smov (!%p196_p2), 96   ;;  %v239_v17 = vld [vmem:[%s829_s2] sm:$0xff] (!%p196_p2)  ;;  %vm305_vm3 = vcmask (!%p196_p2), 64512   ;;  %vm466_vm4 = vcmask (!%p196_p2), 261120   ;;  %v697_v55 = vld [vmem:[%s830_s3 + $0x8] sm:$0xff] (!%p196_p2)  }
   0x7   : > { %654 = vmatprep.subr.bf16.mxu1 (!%p196_p2), %v716_v0  ;;  %656 = vmatprep.mubr.msk.bf16.mxu1 (!%p196_p2), %vm717_vm0, %v716_v0  ;;  %s720_s26 = smov (!%p196_p2), 64   ;;  %s721_s27 = smov (!%p196_p2), 16   ;;  %v696_v54 = vld [vmem:[%s830_s3] sm:$0xff] (!%p196_p2)  }
   0x8   : > { %s722_s28 = smov (!%p196_p2), 48   ;;  %s723_s29 = smov (!%p196_p2), 80   ;;  %v631_v63 = vld [vmem:[%s831_s4] ss:$0 sm:$0xff] (!%p196_p2) }
   0xd   : > { %s834_s19 = smov (!%p225_p3, %s617_s19), 1 }
   0xe   : > { %s768_s20 = sshll.u32 %s834_s19, 3 }
   0xf   : > { %s228_s23 = scalar_lea.vmem %s827_s0, %s768_s20  ;;  %s232_s13 = scalar_lea.vmem %s828_s1, %s768_s20 }
  0x10   : > { %v774_v1 = vld [vmem:[%s228_s23] sm:$0xff]  ;;  %s236_s19 = scalar_lea.vmem %s832_s5, %s768_s20 }
  0x11   : > { %v240_v2 = vpack.c.bf16 %v774_v1, %v774_v1 }
  0x13   : > { %244 = vrot.lane.b32.xlu0 %v240_v2, %s718_s24  ;;  %303 = vrot.lane.b32.xlu1 %v240_v2, %s719_s25 }
  0x17   : > { %242 = vrot.lane.b32.xlu0 %v240_v2, %s720_s26  ;;  %355 = vrot.lane.b32.xlu1 %v240_v2, %s721_s27 }
  0x1b   : > { %353 = vrot.lane.b32.xlu0 %v240_v2, %s722_s28  ;;  %413 = vrot.lane.b32.xlu1 %v240_v2, %s723_s29  ;;  %v549_v2 = vld [vmem:[%s232_s13] sm:$0xff] }
  0x85   : > { %v245_v3 = vpop.permute.xlu0 %244  ;;  %v304_v6 = vpop.permute.xlu1 %303 }
  0x86   : > { %v251_v4 = vsel %vm246_vm1, %v245_v3, 0  ;;  %v311_v7 = vsel %vm309_vm2, %v304_v6, 0 }
  0x87   : > { %649 = vmatpush3.bf16.xpose.msra.mxu0 %v251_v4  ;;  %655 = vmatpush3.bf16.msra.mxu1 %v311_v7 }
  0x88   : > { %666 = vmatprep.subr.bf16.mxu0 %v716_v0  ;;  %660 = vmatprep.subr.bf16.mxu1 %v716_v0 }
  0x89   : > { %v243_v5 = vpop.permute.xlu0 %242  ;;  %v356_v19 = vpop.permute.xlu1 %355 }
  0x8a   : > { %v361_v22 = vsel %vm246_vm1, %v356_v19, 0 }
  0x8d   : > { %v354_v23 = vpop.permute.xlu0 %353  ;;  %v414_v24 = vpop.permute.xlu1 %413 }
  0x8e   : > { %651 = vmatmul.mubr.msk.bf16.vlgmr.msra.gmra.mrb[0].mxu0 %vm246_vm1, %v243_v5  ;;  %v419_v25 = vsel %vm309_vm2, %v414_v24, 0 }
  0x8f   : > { %668 = vmatprep.mubr.msk.bf16.mxu0 %vm717_vm0, %v716_v0  ;;  %667 = vmatpush3.bf16.msra.mxu0 %v419_v25 }
 0x161   : > { %v287_v8 = vpop.f32.mrb[0].mxu0 }
 0x162   : > { %v626_v9 = vmul.f32 -1.442695, %v287_v8  ;;  %v652_v10 = vpop.f32.mrb[1].mxu0 }
 0x163   : > { %v290_v11 = vpop.f32.mrb[2].mxu0 }
 0x164   : > { %698 = vpow2.f32 %v626_v9  ;;  %v653_v12 = vpop.f32.mrb[3].mxu0 }
 0x16e   : > { %v699_v13 = vpop.eup %698 }
 0x16f   : > { %v296_v14 = vadd.f32 1.0, %v699_v13 }
 0x171   : > { %700 = vrcp.f32 %v296_v14 }
 0x17b   : > { %v701_v15 = vpop.eup %700 }
 0x17c   : > { %v299_v16 = vmul.f32 %v701_v15, %v287_v8 }
 0x17e   : > { %v300_v18 = vmul.f32 0.125, %v299_v16 }
 0x180   : > { %v301_v20 = vmul.f32 %v300_v18, %v239_v17 }
 0x182   : > { %v302_v21 = vpack.c.bf16 %v301_v20, %v301_v20 }
 0x184   : > { %657 = vmatmul.mubr.msk.bf16.vlgmr.msra.gmra.mrb[0].mxu1 %vm305_vm3, %v302_v21 }
 0x185   : > { %661 = vmatpush3.bf16.xpose.msra.mxu1 %v361_v22  ;;  %662 = vmatprep.mubr.msk.bf16.mxu1 %vm717_vm0, %v716_v0 }
 0x186   : > { %672 = vmatprep.subr.bf16.mxu1 %v716_v0 }
 0x18c   : > { %663 = vmatmul.mubr.msk.bf16.vlgmr.msra.gmra.mrb[4].mxu1 %vm246_vm1, %v354_v23 }
 0x18d   : > { %676 = vmatprep.mubr.msk.bf16.mxu1 %vm717_vm0, %v716_v0  ;;  %673 = vmatpush3.bf16.msra.mxu1 %v696_v54 }
 0x18e   : > { %674 = vmatprep.subr.bf16.mxu1 %v716_v0 }
 0x191   : > { %675 = vmatpush3.bf16.msra.mxu1 %v697_v55 }
 0x257   : > { %v347_v26 = vpop.f32.mrb[0].mxu1 }
 0x258   : > { %v658_v27 = vpop.f32.mrb[1].mxu1 }
 0x259   : > { %v350_v28 = vpop.f32.mrb[2].mxu1 }
 0x25a   : > { %v659_v29 = vpop.f32.mrb[3].mxu1 }
 0x25f   : > { %v397_v30 = vpop.f32.mrb[4].mxu1 }
 0x260   : > { %v629_v31 = vmul.f32 -1.442695, %v397_v30  ;;  %v664_v32 = vpop.f32.mrb[5].mxu1 }
 0x261   : > { %v400_v33 = vpop.f32.mrb[6].mxu1 }
 0x262   : > { %702 = vpow2.f32 %v629_v31  ;;  %v665_v34 = vpop.f32.mrb[7].mxu1 }
 0x26c   : > { %v703_v35 = vpop.eup %702 }
 0x26d   : > { %v406_v36 = vadd.f32 1.0, %v703_v35 }
 0x26f   : > { %704 = vrcp.f32 %v406_v36 }
 0x279   : > { %v705_v37 = vpop.eup %704 }
 0x27a   : > { %v409_v38 = vmul.f32 %v705_v37, %v397_v30 }
 0x27c   : > { %v410_v39 = vmul.f32 0.125, %v409_v38 }
 0x27e   : > { %v411_v40 = vmul.f32 %v410_v39, %v239_v17 }
 0x280   : > { %v412_v41 = vpack.c.bf16 %v411_v40, %v411_v40 }
 0x282   : > { %669 = vmatmul.mubr.msk.bf16.vlgmr.msra.gmra.mrb[4].mxu0 %vm305_vm3, %v412_v41 }
 0x355   : > { %v455_v42 = vpop.f32.mrb[4].mxu0 }
 0x356   : > { %462 = vrot.lane.b32.xlu0 %v455_v42, %s721_s27  ;;  %v670_v43 = vpop.f32.mrb[5].mxu0 }
 0x357   : > { %v458_v44 = vpop.f32.mrb[6].mxu0 }
 0x358   : > { %v671_v45 = vpop.f32.mrb[7].mxu0 }
 0x3c8   : > { %v463_v46 = vpop.permute.xlu0 %462 }
 0x3c9   : > { %v465_v47 = vsel %vm246_vm1, %v347_v26, %v463_v46 }
 0x3ca   : > { %v467_v48 = vsel %vm466_vm4, %v465_v47, 0.0 }
 0x3cb   : > { %468 = vadd.xlane.f32.xlu1 %v467_v48 }
 0x458   : > { %v469_v49 = vpop.xlane.xlu1 %468 }
 0x459   : > { %v471_v50 = vmul.f32 0.03125, %v469_v49 }
 0x45b   : > { %v472_v51 = vsub.f32 %v465_v47, %v471_v50 }
 0x45d   : > { %v473_v52 = vmul.f32 %v472_v51, %v472_v51 }
 0x45f   : > { %v474_v53 = vsel %vm466_vm4, %v473_v52, 0.0 }
 0x460   : > { %475 = vadd.xlane.f32.xlu0 %v474_v53 }
 0x4ed   : > { %v476_v56 = vpop.xlane.xlu0 %475 }
 0x4ee   : > { %v477_v57 = vmul.f32 0.03125, %v476_v56 }
 0x4f0   : > { %v478_v58 = vadd.f32 1e-06, %v477_v57 }
 0x4f2   : > { %706 = vrsqrt.f32 %v478_v58 }
 0x4fc   : > { %v707_v59 = vpop.eup %706 }
 0x4fd   : > { %v480_v60 = vmul.f32 %v707_v59, %v472_v51 }
 0x4ff   : > { %v481_v61 = vmul.f32 %v480_v60, %v774_v1 }
 0x501   : > { %v482_v62 = vpack.c.bf16 %v481_v61, %v481_v61 }
 0x503   : > { %677 = vmatmul.mubr.msk.bf16.vlgmr.msra.gmra.mrb[8].mxu1 %vm466_vm4, %v482_v62 }
 0x5d6   : > { %v543_v0 = vpop.f32.mrb[8].mxu1 }
 0x5d7   : > { %v544_v3 = vadd.f32 %v631_v63, %v543_v0  ;;  %v678_v4 = vpop.f32.mrb[9].mxu1 }
 0x5d8   : > { %v546_v1 = vpop.f32.mrb[10].mxu1 }
 0x5d9   : > { %v550_v5 = vadd.f32 %v549_v2, %v544_v3  ;;  %v679_v6 = vpop.f32.mrb[11].mxu1 }
 0x5db   : > { %551 = vst.msk [vmem:[%s236_s19] sm:$0xff] %vm466_vm4, %v550_v5 }
 0x5dc PF: > { %s15_s18 = sadd.s32 1, %s714_s18  }
 0x5dd   : > { %p12_p4 = scmp.ge.s32.totalorder %s15_s18, 4  }
 0x5df   :  { %14 = sbr.rel (!%p12_p4) target bundleno = 1 (0x1), region = 73 }

</bundles_post_ra>
